<compile_context>
chip_gen: v7x
topology: tpu7x:2x2x1
jax: 0.10.0
libtpu: 0.0.40
codegen_flags: <defaults>
</compile_context>

<pallas_src>
import functools
import math

import jax
import jax.numpy as jnp
from jax.experimental import pallas as pl
from jax.experimental.pallas import tpu as pltpu

_LANES = 128
_TARGET_TILE_BYTES = 8 << 20     # x-tile + y-tile per grid step (pre double-buffer)
_VMEM_LIMIT_BYTES = 48 << 20     # fits v7x (64 MiB physical) and v5e/v6e (128 MiB)


def _scale_mul_kernel(x_ref, s_ref, y_ref, *, sign, eps):
    """y = (exp(sign*s) + eps) * x, computed in f32, on one tile.

    Handles both layouts via broadcasting:
      2D: x (tb, W),      s (1, W)    -> broadcast over rows
      3D: x (tb, R, 128), s (R, 128)  -> broadcast over the leading axis
    exp lowers to the EUP slot; recomputing the tiny grid-invariant scale per
    step is essentially free and keeps everything in one pallas_call.
    """
    sc = jnp.exp(sign * s_ref[...].astype(jnp.float32)) + eps
    y_ref[...] = (x_ref[...].astype(jnp.float32) * sc).astype(y_ref.dtype)


def _sublane_pack(dtype):
    """Rows packed per sublane group: 8 (f32), 16 (bf16/f16), 32 (int8/fp8)."""
    return 8 * max(1, 4 // jnp.dtype(dtype).itemsize)


def _pick_rows(n, unit, row_bytes):
    """Row-block length: multiple of `unit`, ~_TARGET_TILE_BYTES per step, and
    yielding >= 2 grid blocks when possible (so the "parallel" axis shards
    across both TensorCores on v7x; a harmless extra step on v5e/v6e)."""
    if n <= unit:
        return n                                          # one full block
    budget = max(unit, (_TARGET_TILE_BYTES // max(1, row_bytes) // unit) * unit)
    if n >= 2 * unit:
        budget = min(budget, max(unit, (n // (2 * unit)) * unit))
    return min(budget, n)


def scaling_forward(x, scale_param, log_det_J, reverse=False, eps=1e-5,
                    donate_x=False):
    """Pallas wrapper matching Scaling.forward(x, log_det_J, reverse)."""
    B, D = x.shape
    sign = -1.0 if reverse else 1.0
    out_dtype = jnp.promote_types(x.dtype, jnp.float32)   # torch-like promotion
    s_row = jnp.asarray(scale_param, jnp.float32).reshape(1, D)

    unit = max(8, _sublane_pack(x.dtype))                 # sublane packing rows
    bpe = x.dtype.itemsize + jnp.dtype(out_dtype).itemsize  # in+out bytes/elem

    # ---- choose a lane-dense layout (unmasked full-vreg stores) -----------
    use_flat = False
    if D % _LANES != 0 and (B * D) % _LANES == 0:
        p_rows = math.lcm(D, _LANES) // _LANES        # scale period in flat rows
        r_rows = math.lcm(p_rows, unit)               # sublane-aligned period
        n_flat = (B * D) // _LANES
        use_flat = (n_flat % r_rows == 0
                    and r_rows * _LANES * bpe <= _TARGET_TILE_BYTES)

    if use_flat:
        # Flatten (B, D) -> (n, R, 128); the log-scale becomes a periodic
        # (R, 128) slab with slab[r, l] == s[(r*128 + l) % D]. Lane-dense even
        # for awkward D (e.g. 48) -> no masked partial stores on the output.
        n = n_flat // r_rows
        x_in = x.reshape(n, r_rows, _LANES)
        s_slab = jnp.tile(s_row, (1, math.lcm(D, _LANES) // D)).reshape(p_rows, _LANES)
        s_in = jnp.tile(s_slab, (r_rows // p_rows, 1))   # tiny layout plumbing
        tb = _pick_rows(n, 1, r_rows * _LANES * bpe)
        x_block, s_block = (tb, r_rows, _LANES), (r_rows, _LANES)
        x_index = lambda i: (i, 0, 0)
        out_shape = (n, r_rows, _LANES)
    else:
        # D already lane-dense (D % 128 == 0), or small/odd fallback where the
        # block's last dim equals the full feature dim.
        n = B
        x_in, s_in = x, s_row
        tb = _pick_rows(n, unit, D * bpe)
        x_block, s_block = (tb, D), (1, D)
        x_index = lambda i: (i, 0)
        out_shape = (B, D)

    kernel = functools.partial(_scale_mul_kernel, sign=sign, eps=eps)
    aliases = {0: 0} if (donate_x and x_in.dtype == out_dtype) else {}
    y = pl.pallas_call(
        kernel,
        out_shape=jax.ShapeDtypeStruct(out_shape, out_dtype),
        grid=(pl.cdiv(n, tb),),
        in_specs=[
            pl.BlockSpec(x_block, x_index),
            pl.BlockSpec(s_block, lambda i: (0, 0)),   # grid-invariant scale
        ],
        out_specs=pl.BlockSpec(x_block, x_index),
        input_output_aliases=aliases,
        compiler_params=pltpu.CompilerParams(
            dimension_semantics=("parallel",),
            vmem_limit_bytes=_VMEM_LIMIT_BYTES,
        ),
    )(x_in, s_in)
    y = y.reshape(B, D)

    # Log-det-Jacobian: grid-invariant O(D) reduction -> plain JAX (XLA fuses
    # it), avoiding a second pallas_call's multi-microsecond launch overhead.
    ldj = jnp.asarray(log_det_J, jnp.float32) + jnp.float32(sign) * jnp.sum(s_row)
    return y, ldj


def scaling_reference(x, scale_param, log_det_J, reverse=False, eps=1e-5):
    """Pure-JAX reference mirroring the PyTorch module."""
    s = jnp.asarray(scale_param, jnp.float32).reshape(1, -1)
    ldj_term = jnp.sum(s)
    if not reverse:
        return (jnp.exp(s) + eps) * x, log_det_J + ldj_term
    return (jnp.exp(-s) + eps) * x, log_det_J - ldj_term


if __name__ == "__main__":
    key = jax.random.PRNGKey(0)
    log_det_J = jnp.float32(0.0)

    cases = [
        ((16, 256), jnp.float32),   # D % 128 == 0: row-blocked lane-dense, 2 blocks
        ((256, 48), jnp.float32),   # awkward D: flattened periodic-slab path
        ((8, 48), jnp.float32),     # tiny array: full-block fallback path
        ((32, 256), jnp.bfloat16),  # low precision: f32 scale/compute, f32 out
    ]
    for (B, D), dtype in cases:
        key, kx, ks = jax.random.split(key, 3)
        x = jax.random.normal(kx, (B, D), dtype=jnp.float32).astype(dtype)
        # Module __init__ uses zeros((1, dim)); use a small random log-scale
        # so the exp / sum paths are exercised non-trivially.
        scale_param = 0.1 * jax.random.normal(ks, (1, D), dtype=jnp.float32)

        for reverse in (False, True):
            y, ldj = scaling_forward(x, scale_param, log_det_J, reverse=reverse)
            jax.block_until_ready((y, ldj))
            y_ref, ldj_ref = scaling_reference(
                x, scale_param, log_det_J, reverse=reverse)
            assert y.shape == y_ref.shape and y.dtype == y_ref.dtype, (
                B, D, dtype, reverse, y.dtype, y_ref.dtype)
            assert jnp.allclose(y, y_ref, atol=1e-5, rtol=1e-5), (B, D, dtype, reverse)
            assert jnp.allclose(ldj, ldj_ref, atol=1e-5, rtol=1e-5), (B, D, dtype, reverse)

    print("KERNEL_OK")
</pallas_src>

<mosaic_0001>
module attributes {stable_mosaic.version = 11 : i64} {
  func.func @_scale_mul_kernel(%arg0: i32, %arg1: memref<8x256xf32, #tpu.memory_space<vmem>>, %arg2: memref<1x256xf32, #tpu.memory_space<vmem>>, %arg3: memref<8x256xf32, #tpu.memory_space<vmem>>) attributes {dimension_semantics = [#tpu.dimension_semantics<parallel>], iteration_bounds = array<i64: 2>, scalar_prefetch = 0 : i64, scratch_operands = 0 : i64, tpu.core_type = #tpu.core_type<tc>, window_params = [{transform_indices = @transform_0, window_bounds = array<i64: 8, 256>}, {pipeline_mode = #tpu.pipeline_mode<synchronous>, transform_indices = @transform_1, window_bounds = array<i64: 1, 256>}, {transform_indices = @transform_2, window_bounds = array<i64: 8, 256>}]} {
    %c0 = arith.constant 0 : index
    %c0_0 = arith.constant 0 : index
    %0 = vector.load %arg2[%c0, %c0_0] : memref<1x256xf32, #tpu.memory_space<vmem>>, vector<1x256xf32>
    %cst = arith.constant 1.000000e+00 : f32
    %1 = vector.broadcast %cst : f32 to vector<1x256xf32>
    %2 = arith.mulf %1, %0 : vector<1x256xf32>
    %3 = math.exp %2 : vector<1x256xf32>
    %cst_1 = arith.constant 9.99999974E-6 : f32
    %4 = vector.broadcast %cst_1 : f32 to vector<1x256xf32>
    %5 = arith.addf %3, %4 : vector<1x256xf32>
    %c0_2 = arith.constant 0 : index
    %c0_3 = arith.constant 0 : index
    %6 = vector.load %arg1[%c0_2, %c0_3] : memref<8x256xf32, #tpu.memory_space<vmem>>, vector<8x256xf32>
    %7 = vector.broadcast %5 : vector<1x256xf32> to vector<8x256xf32>
    %8 = arith.mulf %6, %7 : vector<8x256xf32>
    %c0_4 = arith.constant 0 : index
    %c0_5 = arith.constant 0 : index
    %9 = vector.load %arg3[%c0_4, %c0_5] : memref<8x256xf32, #tpu.memory_space<vmem>>, vector<8x256xf32>
    tpu.vector_store %arg3[%c0_4, %c0_5], %8 {strides = array<i32>} : memref<8x256xf32, #tpu.memory_space<vmem>>, vector<8x256xf32>,
    return
  }
  func.func @transform_0(%arg0: i32) -> (i32, i32) {
    %c0_i32 = arith.constant 0 : i32
    %c0_i32_0 = arith.constant 0 : i32
    return %arg0, %c0_i32 : i32, i32
  }
  func.func @transform_1(%arg0: i32) -> (i32, i32) {
    %c0_i32 = arith.constant 0 : i32
    %c0_i32_0 = arith.constant 0 : i32
    %c0_i32_1 = arith.constant 0 : i32
    return %c0_i32, %c0_i32_0 : i32, i32
  }
  func.func @transform_2(%arg0: i32) -> (i32, i32) {
    %c0_i32 = arith.constant 0 : i32
    %c0_i32_0 = arith.constant 0 : i32
    return %arg0, %c0_i32 : i32, i32
  }
}

</mosaic_0001>

<bundles_post_ra>
// kernel: tpu_custom_call.1
= control target key start
LH: loop header
LB: loop body
LE: loop exit
PB: predicated region body
PF: predicated region fallthrough
CT: control target
= control target key end

     0   :  { %7 = vsyncpa [#allocation3], 0  ;;  %s609_s0 = inlined_call_operand.hbm [shape: f32[16,256], index: 0, kind: input, shape index: {}]   ;;  %s610_s1 = inlined_call_operand.vmem [shape: f32[1,256], index: 1, kind: input, shape index: {}]   ;;  %s611_s2 = inlined_call_operand.hbm [shape: f32[16,256], index: 2, kind: output, shape index: {}]  }
   0x1   :  { %9 = vsyncpa [#allocation3 + $0x1], 0 }
   0x2   :  { %10 = vsyncpa [#allocation4], 0 }
   0x3   :  { %12 = vsyncpa [#allocation4 + $0x1], 0  ;;  %s445_s9 = smov 0   ;;  %s447_s10 = smov 0  }
   0x4   :  { %s449_s11 = smov 0   ;;  %s451_s12 = smov 0  }
   0x5 LB: > { %s466_s13 = sadd.s32 4294967295, %s426_s12   ;;  %s266_s14 = sadd.s32 4294967294, %s426_s12   ;;  %s426_s12 = sphi %s451_s12, %s626_s12   ;;  %s422_s11 = sphi %s449_s11, %s625_s11   ;;  %s418_s10 = sphi %s447_s10, %s624_s10   ;;  %s414_s9 = sphi %s445_s9, %s623_s9  }
   0x6   : > { %s470_s15 = sadd.s32 1, %s426_s12   ;;  %s25_s16 = sadd.s32 1, %s422_s11 }
   0x7   : > { %s22_s17 = ssub.s32 %s426_s12, %s470_s15  ;;  %p32_p0 = scmp.ne.s32.totalorder %s422_s11, %s418_s10 }
   0x8   : > { %p23_p1 = scmp.eq.s32.totalorder %s22_s17, 0  ;;  %p33_p2 = scmp.eq.s32.totalorder %s426_s12, 0 }
   0x9   : > { %p38_p3 = scmp.ne.s32.totalorder %s418_s10, %s414_s9  ;;  %p39_p4 = scmp.eq.s32.totalorder %s466_s13, 0 }
   0xa   : > { %s482_s18 = scalar_select %p23_p1, %s422_s11, %s25_s16  }
   0xb   : > { %p484_p5 = por %p33_p2, %p32_p0  ;;  %p488_p6 = por %p39_p4, %p38_p3 }
   0xc   : > { %p83_p7 = scmp.eq.s32.totalorder %s466_s13, 1  ;;  %p89_p8 = scmp.eq.s32.totalorder %s266_s14, 1 }
   0xd   : > { %p294_p10 = scmp.lt.s32.totalorder %s426_s12, 2  ;;  %s112_s23 = sand.u32 1, %s422_s11  }
   0xe   : > { %p495_p11 = por %p83_p7, %p32_p0  ;;  %p499_p12 = por %p89_p8, %p38_p3 }
   0xf   : > { %s280_s24 = sshll.u32 %s426_s12, 8  ;;  %s269_s25 = sshll.u32 %s112_s23, 4 }
  0x10   : > { %s615_s21 = scalar_select %p495_p11, 1, 0 }
  0x11   : > { %s616_s22 = scalar_select %p499_p12, 1, 0 }
  0x12   : > { %s508_s28 = scalar_lea.hbm %s609_s0, %s280_s24  ;;  %s116_s29 = scalar_lea.vmem [#allocation2], %s269_s25 }
  0x13   : > { %s124_s30 = sshll.u32 %s116_s29, 4  ;;  %p512_p13 = pnand %p294_p10, %p484_p5  ;;  %s516_s30 = int_to_ptr.vmem [resolvable:$true] %s124_s30 }
  0x14   : > { %s113_s4 = scalar_lea.sflag [#allocation3], %s112_s23  ;;  %s330_s5 = scalar_lea.hbm %s508_s28, 256 }
  0x15   : > { %p331_p2 = scmp.ne.s32.totalorder %s508_s28, %s330_s5  ;;  %p332_p3 = pneg %p512_p13 }
  0x16   : > { %s335_s8 = scalar_lea.hbm %s609_s0, 512  ;;  %p336_p5 = scmp.lt.u32.totalorder %s508_s28, %s609_s0 }
  0x17   : > { %p333_p4 = pnand %p332_p3, %p331_p2  ;;  %p337_p8 = scmp.lt.u32.totalorder %s335_s8, %s330_s5 }
  0x18   : > { %p339_p9 = scmp.lt.u32.totalorder %s330_s5, %s508_s28 }
  0x19   : > { %p334_p7 = pneg %p333_p4  ;;  %p338_p10 = por %p337_p8, %p336_p5 }
  0x1b   : > { %p340_p0 = por %p339_p9, %p338_p10 }
  0x1d   : > { %p341_p1 = pnand %p340_p0, %p334_p7 }
  0x1f   : > { %344 = shalt.err (!%p341_p1)
}
  0x20   : > { %s345_s17 = scalar_lea.vmem %s516_s30, 256  ;;  %s428_s19 = smov [#allocation2]  }
  0x21   : > { %p346_p2 = scmp.ne.s32.totalorder %s516_s30, %s345_s17  ;;  %s350_s23 = sshll.u32 %s428_s19, 4  ;;  %s351_s23 = int_to_ptr.vmem [resolvable:$false] %s350_s23 }
  0x22   : > { %s352_s24 = scalar_lea.vmem %s351_s23, 512  ;;  %p353_p11 = scmp.lt.s32.totalorder %s516_s30, %s351_s23 }
  0x23   : > { %p348_p4 = pnand %p346_p2, %p332_p3  ;;  %p354_p5 = scmp.lt.s32.totalorder %s352_s24, %s345_s17 }
  0x25   : > { %p349_p12 = pneg %p348_p4  ;;  %p355_p8 = por %p354_p5, %p353_p11 }
  0x27   : > { %p356_p9 = pnand %p355_p8, %p349_p12 }
  0x29   : > { %359 = shalt.err (!%p356_p9)
}
  0x2a   : > { %289 = dma.hbm_to_vmem [thread:$0]  (!%p512_p13), %s508_s28, 256, %s516_s30, %s113_s4  }
  0x2b   : > { %p618_p0 = scmp.lt.s32.totalorder %s426_s12, 3  ;;  %p619_p1 = scmp.ge.s32.totalorder %s426_s12, 1 }
  0x2d   : > { %p130_p3 = pnand %p619_p1, %p618_p0 }
  0x2e   : > { %s550_s25 = sand.u32 (!%p130_p3), 1, %s418_s10  }
  0x2f   : > { %133 = sbr.rel (%p130_p3) target bundleno = 89 (0x59), region = 28  ;;  %s273_s26 = sshll.u32 (!%p130_p3), %s550_s25, 4 }
  0x30   : > { %s136_s27 = scalar_lea.sflag (!%p130_p3), [#allocation3], %s550_s25  ;;  %s139_s29 = scalar_lea.vmem (!%p130_p3), [#allocation2], %s273_s26 }
  0x36   : > { %405 = dma.done.wait (%p488_p6), %s136_s27, 256  }
  0x37   : > { %407 = vsyncadd (%p488_p6), %s136_s27, 4294967040  ;;  %v160_v0 = vld [vmem:[%s610_s1] sm:$0x3]  ;;  %v167_v2 = vlaneseq  ;;  %s159_s30 = scalar_lea.vmem [#allocation5], %s273_s26  ;;  %v165_v9 = vld [vmem:[%s139_s29 + $0x8] sm:$0xff]  ;;  %s281_s20 = sshll.u32 %s466_s13, 8 }
  0x38   : > { %v161_v1 = vmul.f32 1.442695, %v160_v0  ;;  %v164_v8 = vld [vmem:[%s139_s29] sm:$0xff]  ;;  %s196_s4 = sshll.u32 %s159_s30, 4  ;;  %s567_s7 = scalar_lea.hbm %s611_s2, %s281_s20  ;;  %s562_s4 = int_to_ptr.vmem [resolvable:$true] %s196_s4 }
  0x39   : > { %v168_v3 = vshrl.u32 %v167_v2, 7  ;;  %s182_s8 = scalar_lea.sflag [#allocation4], %s550_s25  ;;  %s360_s14 = scalar_lea.vmem %s562_s4, 256 }
  0x3a   : > { %328 = vpow2.f32 %v161_v1  ;;  %p361_p6 = scmp.ne.s32.totalorder %s562_s4, %s360_s14  ;;  %p620_p11 = scmp.ne.s32.totalorder %s615_s21, 0 }
  0x3b   : > { %v169_v4 = vsub.s32 0, %v168_v3  ;;  %v173_v5 = vsub.s32 1, %v168_v3  ;;  %s429_s13 = smov [#allocation5]  }
  0x3c   : > { %p362_p12 = pnand %p361_p6, %p620_p11  ;;  %s364_s16 = sshll.u32 %s429_s13, 4  ;;  %s365_s16 = int_to_ptr.vmem [resolvable:$false] %s364_s16 }
  0x3d   : > { %s366_s17 = scalar_lea.vmem %s365_s16, 512  ;;  %p367_p7 = scmp.lt.s32.totalorder %s562_s4, %s365_s16 }
  0x3e   : > { %p363_p13 = pneg %p362_p12  ;;  %p368_p10 = scmp.lt.s32.totalorder %s366_s17, %s360_s14 }
  0x40   : > { %p369_p2 = por %p368_p10, %p367_p7 }
  0x42   : > { %p370_p4 = pnand %p369_p2, %p363_p13 }
  0x44   : > { %v329_v6 = vpop.eup %328 }
  0x45   : > { %v163_v7 = vadd.f32 1e-05, %v329_v6 }
  0x47   : > { %v170_v10 = vrot.slane %v163_v7, %v169_v4  ;;  %v174_v11 = vrot.slane %v163_v7, %v173_v5 }
  0x49   : > { %v177_v12 = vmul.f32 %v170_v10, %v164_v8  ;;  %v178_v13 = vmul.f32 %v174_v11, %v165_v9 }
  0x4b   : > { %179 = vst [vmem:[%s159_s30] sm:$0xff] %v177_v12  ;;  %180 = vst [vmem:[%s159_s30 + $0x8] sm:$0xff] %v178_v13 }
  0x4c   : > { %373 = shalt.err (!%p370_p4)
}
  0x4d   : > { %s374_s19 = scalar_lea.hbm %s567_s7, 256  ;;  %s378_s25 = scalar_lea.hbm %s611_s2, 512 }
  0x4e   : > { %p375_p5 = scmp.ne.s32.totalorder %s567_s7, %s374_s19  ;;  %p379_p0 = scmp.lt.u32.totalorder %s567_s7, %s611_s2 }
  0x4f   : > { %p380_p1 = scmp.lt.u32.totalorder %s378_s25, %s374_s19  ;;  %p382_p6 = scmp.lt.u32.totalorder %s374_s19, %s567_s7 }
  0x50   : > { %p376_p8 = pnand %p375_p5, %p620_p11 }
  0x51   : > { %p381_p3 = por %p380_p1, %p379_p0 }
  0x52   : > { %p377_p9 = pneg %p376_p8 }
  0x53   : > { %p383_p12 = por %p382_p6, %p381_p3 }
  0x55   : > { %p384_p13 = pnand %p383_p12, %p377_p9 }
  0x57   : > { %387 = shalt.err (!%p384_p13)
}
  0x58   : > { %284 = dma.vmem_to_hbm [thread:$0]  (%p620_p11), %s562_s4, 256, %s567_s7, %s182_s8  }
  0x59 PF: > { %s208_s29 = sand.u32 1, %s414_s9   ;;  %p621_p7 = scmp.ne.s32.totalorder %s616_s22, 0 }
  0x5a   : > { %p622_p10 = scmp.ge.s32.totalorder %s426_s12, 2  ;;  %s209_s3 = scalar_lea.sflag [#allocation4], %s208_s29 }
  0x5c   : > { %p291_p2 = pnand %p622_p10, %p621_p7 }
  0x5e   : > { %409 = dma.done.wait (!%p291_p2), %s209_s3, 256  }
  0x5f   : > { %411 = vsyncadd (!%p291_p2), %s209_s3, 4294967040  ;;  %p15_p4 = scmp.ge.s32.totalorder %s470_s15, 4   ;;  %s623_s9 = smov %s418_s10 }
  0x60   : > { %s624_s10 = smov %s422_s11  ;;  %s625_s11 = smov %s482_s18 }
  0x61   : > { %s626_s12 = smov %s470_s15  ;;  %17 = sbr.rel (!%p15_p4) target bundleno = 5 (0x5), region = 73 }
  0x68   :  { %214 = vsyncpa [#allocation3], 1 }
  0x69   :  { %216 = vsyncpa [#allocation3 + $0x1], 1 }
  0x6a   :  { %217 = vsyncpa [#allocation4], 1 }
  0x6b   :  { %219 = vsyncpa [#allocation4 + $0x1], 1 }

</bundles_post_ra>
